<compile_context>
chip_gen: v7x
topology: tpu7x:2x2x1
jax: 0.10.0
libtpu: 0.0.40
codegen_flags: <defaults>
</compile_context>

<pallas_src>
import functools

import jax
import jax.numpy as jnp
import numpy as np
from jax import lax
from jax.experimental import pallas as pl
from jax.experimental.pallas import tpu as pltpu


def _round_up(v, m):
    return ((v + m - 1) // m) * m


def _device_kind():
    try:
        return jax.devices()[0].device_kind.lower()
    except Exception:
        return ""


def _convlstm_kernel(x_ref, h_ref, c_ref, w_ref, b_ref,
                     h_out_ref, c_out_ref, pflat_ref, *extra_scratch,
                     W, HW, HWp, Cx, Ch, Cop, Cx_pad, Cin_pad, K,
                     margin, per_tap):
    # x_ref   : (1, Cx, HWp)        input activations (NCHW, flat spatial)
    # h_ref   : (1, Ch, HWp)        previous hidden state
    # c_ref   : (1, Ch, HWp)        previous cell state
    # w_ref   : (K*K, 4*Cop, Cin_pad)  if per_tap else (4*Cop, K*K*Cin_pad)
    # b_ref   : (4*Cop, 1)          conv bias (f32)
    # pflat_ref : (Cin_pad, L)      H-padded, flat [x ; h] staging buffer
    # extra_scratch: (imcol_ref,)   only for the im2col path
    pad = K // 2
    base = margin + pad * W          # 128-aligned lane offset of image pixel (0,0)
    sdt = pflat_ref.dtype            # staging / compute dtype
    wdt = w_ref.dtype

    # ---- zero ONLY the regions never overwritten by the staging stores ----
    halo = pad * W + pad
    # left halo (read by taps above the first image rows)
    pflat_ref[:, base - halo:base] = jnp.zeros((Cin_pad, halo), sdt)
    # right halo (read by taps below the last image rows); the part inside
    # [base+HW, base+HWp) is already zero via the wrapper's lane padding.
    right_end = base + HW + halo
    if right_end > base + HWp:
        pflat_ref[:, base + HWp:right_end] = (
            jnp.zeros((Cin_pad, right_end - (base + HWp)), sdt))
    # pad-channel rows (their weight columns are zero, but stale VMEM could
    # hold NaN, so they must be finite -> zero them; only a few rows).
    if Cx_pad > Cx:
        pflat_ref[Cx:Cx_pad, base:base + HWp] = jnp.zeros((Cx_pad - Cx, HWp), sdt)
    if Cin_pad > Cx_pad + Ch:
        pflat_ref[Cx_pad + Ch:Cin_pad, base:base + HWp] = (
            jnp.zeros((Cin_pad - (Cx_pad + Ch), HWp), sdt))

    # ---- stage [x ; h]; the single cast to compute dtype happens here ------
    pflat_ref[0:Cx, base:base + HWp] = x_ref[0].astype(sdt)
    pflat_ref[Cx_pad:Cx_pad + Ch, base:base + HWp] = h_ref[0].astype(sdt)

    # ---- K-1 W-boundary masks, built once and reused for every ky ----------
    col_x = lax.broadcasted_iota(jnp.int32, (Cin_pad, HWp), 1) % W
    edge_mask = {}
    for kx in range(K):
        if kx == pad:
            continue
        lo = max(pad - kx, 0)
        hi = min(W - (kx - pad), W)
        edge_mask[kx] = jnp.logical_and(col_x >= lo, col_x < hi).astype(sdt)

    def tap_window(ky, kx):
        start = margin + ky * W + kx - pad
        win = pflat_ref[:, start:start + HWp]
        if kx != pad:
            win = win * edge_mask[kx]        # zero the W-boundary wrap columns
        if win.dtype != wdt:
            win = win.astype(wdt)
        return win

    if per_tap:
        # v7x path: no im2col scratch; MXU accumulates K*K small matmuls.
        acc = jnp.zeros((4 * Cop, HWp), jnp.float32)
        for ky in range(K):
            for kx in range(K):
                t = ky * K + kx
                acc = acc + jnp.dot(w_ref[t], tap_window(ky, kx),
                                    preferred_element_type=jnp.float32)
    else:
        # v5e / v6e path: im2col buffer + ONE fused MXU matmul.
        imcol_ref = extra_scratch[0]
        for ky in range(K):
            for kx in range(K):
                t = ky * K + kx
                imcol_ref[t * Cin_pad:(t + 1) * Cin_pad, :] = tap_window(ky, kx)
        acc = jnp.dot(w_ref[...], imcol_ref[...],
                      preferred_element_type=jnp.float32)

    acc = acc + b_ref[...].astype(jnp.float32)     # (4*Cop, 1) lane-broadcast

    # Gate slices start at multiples of Cop (a multiple of 8): sublane-aligned.
    i = jax.nn.sigmoid(acc[0 * Cop:0 * Cop + Ch, :])
    f = jax.nn.sigmoid(acc[1 * Cop:1 * Cop + Ch, :])
    o = jax.nn.sigmoid(acc[2 * Cop:2 * Cop + Ch, :])
    g = jnp.tanh(acc[3 * Cop:3 * Cop + Ch, :])

    c_cur = c_ref[0].astype(jnp.float32)
    c_next = f * c_cur + i * g
    h_next = o * jnp.tanh(c_next)

    h_out_ref[0] = h_next.astype(h_out_ref.dtype)
    c_out_ref[0] = c_next.astype(c_out_ref.dtype)


def _bilinear_align_corners(x_nchw, out_h, out_w):
    """PyTorch F.interpolate(..., mode='bilinear', align_corners=True). Pure-JAX
    glue; a no-op whenever the spatial sizes already match."""
    B, C, H, W = x_nchw.shape
    if (H, W) == (out_h, out_w):
        return x_nchw
    ys = jnp.linspace(0.0, H - 1, out_h)
    xs = jnp.linspace(0.0, W - 1, out_w)
    y0 = jnp.clip(jnp.floor(ys).astype(jnp.int32), 0, H - 1)
    y1 = jnp.clip(y0 + 1, 0, H - 1)
    x0 = jnp.clip(jnp.floor(xs).astype(jnp.int32), 0, W - 1)
    x1 = jnp.clip(x0 + 1, 0, W - 1)
    wy = (ys - y0).reshape(1, 1, out_h, 1)
    wx = (xs - x0).reshape(1, 1, 1, out_w)
    g00 = x_nchw[:, :, y0][:, :, :, x0]
    g01 = x_nchw[:, :, y0][:, :, :, x1]
    g10 = x_nchw[:, :, y1][:, :, :, x0]
    g11 = x_nchw[:, :, y1][:, :, :, x1]
    top = g00 * (1 - wx) + g01 * wx
    bot = g10 * (1 - wx) + g11 * wx
    return top * (1 - wy) + bot * wy


def convlstm_cell_forward(x_nchw, h_nchw, c_nchw, weight_oihw, bias,
                          kernel_size, *, compute_dtype=jnp.float32,
                          accumulate_per_tap=None):
    """ConvLSTMCell.forward.  All tensors NCHW (PyTorch convention).

    compute_dtype controls the MXU operand / staging dtype (gate and cell math
    stays f32); jnp.bfloat16 is recommended on v6e / v7x (and is also correct,
    just slightly less VPU-optimal, on v5e).  accumulate_per_tap=None picks the
    conv path from the device kind (per-tap matmuls on v7x, im2col otherwise).
    """
    K = int(kernel_size)
    assert K % 2 == 1, "ConvLSTMCell assumes an odd kernel_size ('same' conv)."

    H, W = x_nchw.shape[2], x_nchw.shape[3]
    h_nchw = _bilinear_align_corners(h_nchw, H, W)
    c_nchw = _bilinear_align_corners(c_nchw, H, W)

    B, Cx = x_nchw.shape[0], x_nchw.shape[1]
    Ch = h_nchw.shape[1]
    pad = K // 2
    HW = H * W
    HWp = _round_up(HW, 128)          # lane-dense (unmasked vst) output width

    kind = _device_kind()
    if accumulate_per_tap is None:
        accumulate_per_tap = "v7" in kind

    itemsize = jnp.dtype(compute_dtype).itemsize
    align = 8 * max(1, 4 // itemsize)          # 8 (f32), 16 (bf16), 32 (8-bit)
    Cx_pad = _round_up(Cx, align)
    Ch_pad = _round_up(Ch, align)
    Cin_pad = Cx_pad + Ch_pad
    Cop = _round_up(Ch, 8)                     # per-gate output rows (aligned)

    # Weight OIHW (4Ch, Cx+Ch, K, K) -> padded, tap-major / channel-fast pack.
    w_t = jnp.transpose(weight_oihw, (0, 2, 3, 1))                # (4Ch,K,K,Cin)
    w_x = jnp.pad(w_t[..., :Cx], ((0, 0),) * 3 + ((0, Cx_pad - Cx),))
    w_h = jnp.pad(w_t[..., Cx:], ((0, 0),) * 3 + ((0, Ch_pad - Ch),))
    w_cat = jnp.concatenate([w_x, w_h], axis=-1)                  # (4Ch,K,K,Cin_pad)
    w_g = w_cat.reshape(4, Ch, K, K, Cin_pad)
    w_g = jnp.pad(w_g, ((0, 0), (0, Cop - Ch), (0, 0), (0, 0), (0, 0)))
    if accumulate_per_tap:
        w_mat = jnp.transpose(w_g, (2, 3, 0, 1, 4)).reshape(K * K, 4 * Cop, Cin_pad)
        w_spec = pl.BlockSpec((K * K, 4 * Cop, Cin_pad), lambda b: (0, 0, 0))
    else:
        w_mat = w_g.reshape(4 * Cop, K * K * Cin_pad)
        w_spec = pl.BlockSpec((4 * Cop, K * K * Cin_pad), lambda b: (0, 0))
    w_mat = w_mat.astype(compute_dtype)
    b_col = jnp.pad(bias.reshape(4, Ch), ((0, 0), (0, Cop - Ch)))
    b_col = b_col.reshape(4 * Cop, 1).astype(jnp.float32)

    # Free reshapes (NCHW is contiguous over (H, W)); lane padding only when
    # H*W is not already a multiple of 128.
    x_flat = x_nchw.reshape(B, Cx, HW)
    h_flat = h_nchw.reshape(B, Ch, HW)
    c_flat = c_nchw.reshape(B, Ch, HW)
    if HWp != HW:
        padw = ((0, 0), (0, 0), (0, HWp - HW))
        x_flat = jnp.pad(x_flat, padw)
        h_flat = jnp.pad(h_flat, padw)
        c_flat = jnp.pad(c_flat, padw)

    # Staging-buffer geometry: image pixel (0,0) lands on a 128-aligned lane.
    margin = pad + ((-(pad + pad * W)) % 128)
    base = margin + pad * W
    L = _round_up(base + HWp + pad * W + pad, 128)

    scratch = [pltpu.VMEM((Cin_pad, L), compute_dtype)]            # staging
    if not accumulate_per_tap:
        scratch.append(pltpu.VMEM((K * K * Cin_pad, HWp), compute_dtype))

    # Derive the VMEM limit from actual block/scratch/live sizes (capped per
    # chip generation) instead of hard-coding 32 MiB.
    in_b = jnp.dtype(x_nchw.dtype).itemsize
    out_b = jnp.dtype(h_nchw.dtype).itemsize
    block_bytes = ((Cx + 2 * Ch) * HWp * in_b          # x, h, c input blocks
                   + 2 * Ch * HWp * out_b              # h, c output blocks
                   + w_mat.size * itemsize + 4 * Cop * 4)
    scratch_bytes = Cin_pad * L * itemsize
    if not accumulate_per_tap:
        scratch_bytes += K * K * Cin_pad * HWp * itemsize
    live_bytes = (6 * 4 * Cop * HWp + (K + 2) * Cin_pad * HWp) * 4
    need = 2 * block_bytes + scratch_bytes + live_bytes + (4 << 20)
    cap = (48 << 20) if "v7" in kind else (100 << 20)
    vmem_limit = int(min(cap, max(need, 32 << 20)))

    kernel = functools.partial(
        _convlstm_kernel, W=W, HW=HW, HWp=HWp, Cx=Cx, Ch=Ch, Cop=Cop,
        Cx_pad=Cx_pad, Cin_pad=Cin_pad, K=K, margin=margin,
        per_tap=accumulate_per_tap)

    h_next, c_next = pl.pallas_call(
        kernel,
        out_shape=(jax.ShapeDtypeStruct((B, Ch, HWp), h_nchw.dtype),
                   jax.ShapeDtypeStruct((B, Ch, HWp), c_nchw.dtype)),
        grid_spec=pltpu.PrefetchScalarGridSpec(
            num_scalar_prefetch=0,
            grid=(B,),
            in_specs=[
                pl.BlockSpec((1, Cx, HWp), lambda b: (b, 0, 0)),
                pl.BlockSpec((1, Ch, HWp), lambda b: (b, 0, 0)),
                pl.BlockSpec((1, Ch, HWp), lambda b: (b, 0, 0)),
                w_spec,
                pl.BlockSpec((4 * Cop, 1), lambda b: (0, 0)),
            ],
            out_specs=[
                pl.BlockSpec((1, Ch, HWp), lambda b: (b, 0, 0)),
                pl.BlockSpec((1, Ch, HWp), lambda b: (b, 0, 0)),
            ],
            scratch_shapes=scratch,
        ),
        compiler_params=pltpu.CompilerParams(
            dimension_semantics=("parallel",),   # v7x: shard batch over 2 TCs
            vmem_limit_bytes=vmem_limit,
        ),
    )(x_flat, h_flat, c_flat, w_mat, b_col)

    # TODO(synk): for very large H*W, add a second grid axis tiling H into
    # Ht-row blocks with a (K-1)-row halo via manual make_async_copy so the
    # per-step VMEM footprint is independent of the image size.
    if HWp != HW:
        h_next = h_next[:, :, :HW]
        c_next = c_next[:, :, :HW]
    return (h_next.reshape(B, Ch, H, W), c_next.reshape(B, Ch, H, W))


def _reference_forward(x, h, c, weight_oihw, bias, kernel_size):
    """Pure-JAX reference (matches PyTorch semantics) for validation."""
    pad = kernel_size // 2
    comb = jnp.concatenate([x, h], axis=1)  # NCHW
    conv = lax.conv_general_dilated(
        comb, weight_oihw, window_strides=(1, 1),
        padding=[(pad, pad), (pad, pad)],
        dimension_numbers=("NCHW", "OIHW", "NCHW"))
    conv = conv + bias.reshape(1, -1, 1, 1)
    cc_i, cc_f, cc_o, cc_g = jnp.split(conv, 4, axis=1)
    i = jax.nn.sigmoid(cc_i)
    f = jax.nn.sigmoid(cc_f)
    o = jax.nn.sigmoid(cc_o)
    g = jnp.tanh(cc_g)
    c_next = f * c + i * g
    h_next = o * jnp.tanh(c_next)
    return h_next, c_next


if __name__ == "__main__":
    # Small deterministic config.
    input_dim, hidden_dim, kernel_size = 4, 8, 3
    B, H, W = 2, 16, 16

    key = jax.random.PRNGKey(0)
    k_x, k_h, k_c, k_w, k_b = jax.random.split(key, 5)

    x = jax.random.normal(k_x, (B, input_dim, H, W), dtype=jnp.float32)
    h_cur = jax.random.normal(k_h, (B, hidden_dim, H, W), dtype=jnp.float32)
    c_cur = jax.random.normal(k_c, (B, hidden_dim, H, W), dtype=jnp.float32)

    cin_total = input_dim + hidden_dim
    weight = jax.random.normal(
        k_w, (4 * hidden_dim, cin_total, kernel_size, kernel_size),
        dtype=jnp.float32) * 0.1
    bias = jax.random.normal(k_b, (4 * hidden_dim,), dtype=jnp.float32) * 0.1

    h_gold, c_gold = _reference_forward(x, h_cur, c_cur, weight, bias,
                                        kernel_size)

    # f32 MXU operands: tight correctness check on BOTH conv paths
    # (im2col single matmul, and per-tap accumulation used on v7x).
    for per_tap in (False, True):
        h_next, c_next = convlstm_cell_forward(
            x, h_cur, c_cur, weight, bias, kernel_size,
            compute_dtype=jnp.float32, accumulate_per_tap=per_tap)
        jax.block_until_ready((h_next, c_next))
        np.testing.assert_allclose(np.asarray(h_next), np.asarray(h_gold),
                                   rtol=1e-4, atol=1e-4)
        np.testing.assert_allclose(np.asarray(c_next), np.asarray(c_gold),
                                   rtol=1e-4, atol=1e-4)

    # bf16 MXU operands (recommended on v6e/v7x): loose sanity check only,
    # since the conv operands are rounded to bf16.
    h_bf, c_bf = convlstm_cell_forward(x, h_cur, c_cur, weight, bias,
                                       kernel_size,
                                       compute_dtype=jnp.bfloat16)
    jax.block_until_ready((h_bf, c_bf))
    np.testing.assert_allclose(np.asarray(h_bf), np.asarray(h_gold),
                               rtol=1e-1, atol=1e-1)
    np.testing.assert_allclose(np.asarray(c_bf), np.asarray(c_gold),
                               rtol=1e-1, atol=1e-1)

    print("KERNEL_OK")
</pallas_src>

<mosaic_0001>
module attributes {stable_mosaic.version = 11 : i64} {
  func.func @_convlstm_kernel(%arg0: i32, %arg1: memref<1x4x256xf32, #tpu.memory_space<vmem>>, %arg2: memref<1x8x256xf32, #tpu.memory_space<vmem>>, %arg3: memref<1x8x256xf32, #tpu.memory_space<vmem>>, %arg4: memref<32x144xf32, #tpu.memory_space<vmem>>, %arg5: memref<32x1xf32, #tpu.memory_space<vmem>>, %arg6: memref<1x8x256xf32, #tpu.memory_space<vmem>>, %arg7: memref<1x8x256xf32, #tpu.memory_space<vmem>>, %arg8: memref<16x512xf32, #tpu.memory_space<vmem>>, %arg9: memref<144x256xf32, #tpu.memory_space<vmem>>) attributes {dimension_semantics = [#tpu.dimension_semantics<parallel>], iteration_bounds = array<i64: 2>, scalar_prefetch = 0 : i64, scratch_operands = 2 : i64, tpu.core_type = #tpu.core_type<tc>, window_params = [{transform_indices = @transform_0, window_bounds = array<i64: 1, 4, 256>}, {transform_indices = @transform_1, window_bounds = array<i64: 1, 8, 256>}, {transform_indices = @transform_2, window_bounds = array<i64: 1, 8, 256>}, {pipeline_mode = #tpu.pipeline_mode<synchronous>, transform_indices = @transform_3, window_bounds = array<i64: 32, 144>}, {pipeline_mode = #tpu.pipeline_mode<synchronous>, transform_indices = @transform_4, window_bounds = array<i64: 32, 1>}, {transform_indices = @transform_5, window_bounds = array<i64: 1, 8, 256>}, {transform_indices = @transform_6, window_bounds = array<i64: 1, 8, 256>}]} {
    %cst = arith.constant 0.000000e+00 : f32
    %0 = vector.broadcast %cst : f32 to vector<16x17xf32>
    %c0 = arith.constant 0 : index
    %c111 = arith.constant 111 : index
    %1 = vector.load %arg8[%c0, %c111] : memref<16x512xf32, #tpu.memory_space<vmem>>, vector<16x17xf32>
    tpu.vector_store %arg8[%c0, %c111], %0 {strides = array<i32>} : memref<16x512xf32, #tpu.memory_space<vmem>>, vector<16x17xf32>,
    %cst_0 = arith.constant 0.000000e+00 : f32
    %2 = vector.broadcast %cst_0 : f32 to vector<16x17xf32>
    %c0_1 = arith.constant 0 : index
    %c384 = arith.constant 384 : index
    %3 = vector.load %arg8[%c0_1, %c384] : memref<16x512xf32, #tpu.memory_space<vmem>>, vector<16x17xf32>
    tpu.vector_store %arg8[%c0_1, %c384], %2 {strides = array<i32>} : memref<16x512xf32, #tpu.memory_space<vmem>>, vector<16x17xf32>,
    %cst_2 = arith.constant 0.000000e+00 : f32
    %4 = vector.broadcast %cst_2 : f32 to vector<4x256xf32>
    %c4 = arith.constant 4 : index
    %c128 = arith.constant 128 : index
    %5 = vector.load %arg8[%c4, %c128] : memref<16x512xf32, #tpu.memory_space<vmem>>, vector<4x256xf32>
    tpu.vector_store %arg8[%c4, %c128], %4 {strides = array<i32>} : memref<16x512xf32, #tpu.memory_space<vmem>>, vector<4x256xf32>,
    %c0_3 = arith.constant 0 : index
    %c0_4 = arith.constant 0 : index
    %c0_5 = arith.constant 0 : index
    %6 = vector.load %arg1[%c0_3, %c0_4, %c0_5] : memref<1x4x256xf32, #tpu.memory_space<vmem>>, vector<1x4x256xf32>
    %7 = vector.shape_cast %6 : vector<1x4x256xf32> to vector<4x256xf32>
    %c0_6 = arith.constant 0 : index
    %c128_7 = arith.constant 128 : index
    %8 = vector.load %arg8[%c0_6, %c128_7] : memref<16x512xf32, #tpu.memory_space<vmem>>, vector<4x256xf32>
    tpu.vector_store %arg8[%c0_6, %c128_7], %7 {strides = array<i32>} : memref<16x512xf32, #tpu.memory_space<vmem>>, vector<4x256xf32>,
    %c0_8 = arith.constant 0 : index
    %c0_9 = arith.constant 0 : index
    %c0_10 = arith.constant 0 : index
    %9 = vector.load %arg2[%c0_8, %c0_9, %c0_10] : memref<1x8x256xf32, #tpu.memory_space<vmem>>, vector<1x8x256xf32>
    %10 = vector.shape_cast %9 : vector<1x8x256xf32> to vector<8x256xf32>
    %c8 = arith.constant 8 : index
    %c128_11 = arith.constant 128 : index
    %11 = vector.load %arg8[%c8, %c128_11] : memref<16x512xf32, #tpu.memory_space<vmem>>, vector<8x256xf32>
    tpu.vector_store %arg8[%c8, %c128_11], %10 {strides = array<i32>} : memref<16x512xf32, #tpu.memory_space<vmem>>, vector<8x256xf32>,
    %12 = tpu.iota {dimensions = array<i32: 1>} : vector<16x256xi32>
    %c16_i32 = arith.constant 16 : i32
    %c0_i32 = arith.constant 0 : i32
    %13 = arith.cmpi eq, %c16_i32, %c0_i32 : i32
    %c1_i32 = arith.constant 1 : i32
    %14 = arith.select %13, %c1_i32, %c16_i32 : i32
    %15 = vector.broadcast %14 : i32 to vector<16x256xi32>
    %16 = arith.remsi %12, %15 : vector<16x256xi32>
    %c0_i32_12 = arith.constant 0 : i32
    %17 = vector.broadcast %c0_i32_12 : i32 to vector<16x256xi32>
    %18 = arith.cmpi ne, %16, %17 : vector<16x256xi32>
    %c0_i32_13 = arith.constant 0 : i32
    %19 = vector.broadcast %c0_i32_13 : i32 to vector<16x256xi32>
    %20 = arith.cmpi slt, %16, %19 : vector<16x256xi32>
    %c0_i32_14 = arith.constant 0 : i32
    %21 = arith.cmpi slt, %14, %c0_i32_14 : i32
    %22 = vector.broadcast %21 : i1 to vector<16x256xi1>
    %23 = vector.broadcast %22 : vector<16x256xi1> to vector<16x256xi1>
    %24 = arith.xori %20, %23 : vector<16x256xi1>
    %25 = arith.andi %24, %18 : vector<16x256xi1>
    %26 = vector.broadcast %14 : i32 to vector<16x256xi32>
    %27 = arith.addi %16, %26 : vector<16x256xi32>
    %28 = arith.select %25, %27, %16 : vector<16x256xi1>, vector<16x256xi32>
    %c1_i32_15 = arith.constant 1 : i32
    %29 = vector.broadcast %c1_i32_15 : i32 to vector<16x256xi32>
    %30 = arith.cmpi sge, %28, %29 : vector<16x256xi32>
    %c16_i32_16 = arith.constant 16 : i32
    %31 = vector.broadcast %c16_i32_16 : i32 to vector<16x256xi32>
    %32 = arith.cmpi slt, %28, %31 : vector<16x256xi32>
    %33 = arith.andi %30, %32 : vector<16x256xi1>
    %34 = arith.extui %33 : vector<16x256xi1> to vector<16x256xi32>
    %35 = arith.sitofp %34 : vector<16x256xi32> to vector<16x256xf32>
    %c0_i32_17 = arith.constant 0 : i32
    %36 = vector.broadcast %c0_i32_17 : i32 to vector<16x256xi32>
    %37 = arith.cmpi sge, %28, %36 : vector<16x256xi32>
    %c15_i32 = arith.constant 15 : i32
    %38 = vector.broadcast %c15_i32 : i32 to vector<16x256xi32>
    %39 = arith.cmpi slt, %28, %38 : vector<16x256xi32>
    %40 = arith.andi %37, %39 : vector<16x256xi1>
    %41 = arith.extui %40 : vector<16x256xi1> to vector<16x256xi32>
    %42 = arith.sitofp %41 : vector<16x256xi32> to vector<16x256xf32>
    %c0_18 = arith.constant 0 : index
    %c111_19 = arith.constant 111 : index
    %43 = vector.load %arg8[%c0_18, %c111_19] : memref<16x512xf32, #tpu.memory_space<vmem>>, vector<16x256xf32>
    %44 = arith.mulf %43, %35 : vector<16x256xf32>
    %c0_20 = arith.constant 0 : index
    %c0_21 = arith.constant 0 : index
    %45 = vector.load %arg9[%c0_20, %c0_21] : memref<144x256xf32, #tpu.memory_space<vmem>>, vector<16x256xf32>
    tpu.vector_store %arg9[%c0_20, %c0_21], %44 {strides = array<i32>} : memref<144x256xf32, #tpu.memory_space<vmem>>, vector<16x256xf32>,
    %c0_22 = arith.constant 0 : index
    %c112 = arith.constant 112 : index
    %46 = vector.load %arg8[%c0_22, %c112] : memref<16x512xf32, #tpu.memory_space<vmem>>, vector<16x256xf32>
    %c16 = arith.constant 16 : index
    %c0_23 = arith.constant 0 : index
    %47 = vector.load %arg9[%c16, %c0_23] : memref<144x256xf32, #tpu.memory_space<vmem>>, vector<16x256xf32>
    tpu.vector_store %arg9[%c16, %c0_23], %46 {strides = array<i32>} : memref<144x256xf32, #tpu.memory_space<vmem>>, vector<16x256xf32>,
    %c0_24 = arith.constant 0 : index
    %c113 = arith.constant 113 : index
    %48 = vector.load %arg8[%c0_24, %c113] : memref<16x512xf32, #tpu.memory_space<vmem>>, vector<16x256xf32>
    %49 = arith.mulf %48, %42 : vector<16x256xf32>
    %c32 = arith.constant 32 : index
    %c0_25 = arith.constant 0 : index
    %50 = vector.load %arg9[%c32, %c0_25] : memref<144x256xf32, #tpu.memory_space<vmem>>, vector<16x256xf32>
    tpu.vector_store %arg9[%c32, %c0_25], %49 {strides = array<i32>} : memref<144x256xf32, #tpu.memory_space<vmem>>, vector<16x256xf32>,
    %c0_26 = arith.constant 0 : index
    %c127 = arith.constant 127 : index
    %51 = vector.load %arg8[%c0_26, %c127] : memref<16x512xf32, #tpu.memory_space<vmem>>, vector<16x256xf32>
    %52 = arith.mulf %51, %35 : vector<16x256xf32>
    %c48 = arith.constant 48 : index
    %c0_27 = arith.constant 0 : index
    %53 = vector.load %arg9[%c48, %c0_27] : memref<144x256xf32, #tpu.memory_space<vmem>>, vector<16x256xf32>
    tpu.vector_store %arg9[%c48, %c0_27], %52 {strides = array<i32>} : memref<144x256xf32, #tpu.memory_space<vmem>>, vector<16x256xf32>,
    %c0_28 = arith.constant 0 : index
    %c128_29 = arith.constant 128 : index
    %54 = vector.load %arg8[%c0_28, %c128_29] : memref<16x512xf32, #tpu.memory_space<vmem>>, vector<16x256xf32>
    %c64 = arith.constant 64 : index
    %c0_30 = arith.constant 0 : index
    %55 = vector.load %arg9[%c64, %c0_30] : memref<144x256xf32, #tpu.memory_space<vmem>>, vector<16x256xf32>
    tpu.vector_store %arg9[%c64, %c0_30], %54 {strides = array<i32>} : memref<144x256xf32, #tpu.memory_space<vmem>>, vector<16x256xf32>,
    %c0_31 = arith.constant 0 : index
    %c129 = arith.constant 129 : index
    %56 = vector.load %arg8[%c0_31, %c129] : memref<16x512xf32, #tpu.memory_space<vmem>>, vector<16x256xf32>
    %57 = arith.mulf %56, %42 : vector<16x256xf32>
    %c80 = arith.constant 80 : index
    %c0_32 = arith.constant 0 : index
    %58 = vector.load %arg9[%c80, %c0_32] : memref<144x256xf32, #tpu.memory_space<vmem>>, vector<16x256xf32>
    tpu.vector_store %arg9[%c80, %c0_32], %57 {strides = array<i32>} : memref<144x256xf32, #tpu.memory_space<vmem>>, vector<16x256xf32>,
    %c0_33 = arith.constant 0 : index
    %c143 = arith.constant 143 : index
    %59 = vector.load %arg8[%c0_33, %c143] : memref<16x512xf32, #tpu.memory_space<vmem>>, vector<16x256xf32>
    %60 = arith.mulf %59, %35 : vector<16x256xf32>
    %c96 = arith.constant 96 : index
    %c0_34 = arith.constant 0 : index
    %61 = vector.load %arg9[%c96, %c0_34] : memref<144x256xf32, #tpu.memory_space<vmem>>, vector<16x256xf32>
    tpu.vector_store %arg9[%c96, %c0_34], %60 {strides = array<i32>} : memref<144x256xf32, #tpu.memory_space<vmem>>, vector<16x256xf32>,
    %c0_35 = arith.constant 0 : index
    %c144 = arith.constant 144 : index
    %62 = vector.load %arg8[%c0_35, %c144] : memref<16x512xf32, #tpu.memory_space<vmem>>, vector<16x256xf32>
    %c112_36 = arith.constant 112 : index
    %c0_37 = arith.constant 0 : index
    %63 = vector.load %arg9[%c112_36, %c0_37] : memref<144x256xf32, #tpu.memory_space<vmem>>, vector<16x256xf32>
    tpu.vector_store %arg9[%c112_36, %c0_37], %62 {strides = array<i32>} : memref<144x256xf32, #tpu.memory_space<vmem>>, vector<16x256xf32>,
    %c0_38 = arith.constant 0 : index
    %c145 = arith.constant 145 : index
    %64 = vector.load %arg8[%c0_38, %c145] : memref<16x512xf32, #tpu.memory_space<vmem>>, vector<16x256xf32>
    %65 = arith.mulf %64, %42 : vector<16x256xf32>
    %c128_39 = arith.constant 128 : index
    %c0_40 = arith.constant 0 : index
    %66 = vector.load %arg9[%c128_39, %c0_40] : memref<144x256xf32, #tpu.memory_space<vmem>>, vector<16x256xf32>
    tpu.vector_store %arg9[%c128_39, %c0_40], %65 {strides = array<i32>} : memref<144x256xf32, #tpu.memory_space<vmem>>, vector<16x256xf32>,
    %c0_41 = arith.constant 0 : index
    %c0_42 = arith.constant 0 : index
    %67 = vector.load %arg4[%c0_41, %c0_42] : memref<32x144xf32, #tpu.memory_space<vmem>>, vector<32x144xf32>
    %c0_43 = arith.constant 0 : index
    %c0_44 = arith.constant 0 : index
    %68 = vector.load %arg9[%c0_43, %c0_44] : memref<144x256xf32, #tpu.memory_space<vmem>>, vector<144x256xf32>
    %cst_45 = arith.constant dense<0.000000e+00> : vector<32x256xf32>
    %69 = tpu.matmul %67, %68, %cst_45 {dimension_numbers = #tpu.dot_dimension_numbers<[1], [0], [0], [1], [0, 0, 1, 1], [], []>} : vector<32x144xf32>, vector<144x256xf32>, vector<32x256xf32> -> vector<32x256xf32>
    %c0_46 = arith.constant 0 : index
    %c0_47 = arith.constant 0 : index
    %70 = vector.load %arg5[%c0_46, %c0_47] : memref<32x1xf32, #tpu.memory_space<vmem>>, vector<32x1xf32>
    %71 = vector.broadcast %70 : vector<32x1xf32> to vector<32x256xf32>
    %72 = arith.addf %69, %71 : vector<32x256xf32>
    %73 = vector.extract_strided_slice %72 {offsets = [0, 0], sizes = [8, 256], strides = [1, 1]} : vector<32x256xf32> to vector<8x256xf32>
    %74 = arith.negf %73 : vector<8x256xf32>
    %75 = math.exp %74 : vector<8x256xf32>
    %cst_48 = arith.constant 1.000000e+00 : f32
    %76 = vector.broadcast %cst_48 : f32 to vector<8x256xf32>
    %77 = arith.addf %76, %75 : vector<8x256xf32>
    %78 = arith.divf %76, %77 : vector<8x256xf32>
    %79 = vector.extract_strided_slice %72 {offsets = [8, 0], sizes = [8, 256], strides = [1, 1]} : vector<32x256xf32> to vector<8x256xf32>
    %80 = arith.negf %79 : vector<8x256xf32>
    %81 = math.exp %80 : vector<8x256xf32>
    %cst_49 = arith.constant 1.000000e+00 : f32
    %82 = vector.broadcast %cst_49 : f32 to vector<8x256xf32>
    %83 = arith.addf %82, %81 : vector<8x256xf32>
    %84 = arith.divf %82, %83 : vector<8x256xf32>
    %85 = vector.extract_strided_slice %72 {offsets = [16, 0], sizes = [8, 256], strides = [1, 1]} : vector<32x256xf32> to vector<8x256xf32>
    %86 = arith.negf %85 : vector<8x256xf32>
    %87 = math.exp %86 : vector<8x256xf32>
    %cst_50 = arith.constant 1.000000e+00 : f32
    %88 = vector.broadcast %cst_50 : f32 to vector<8x256xf32>
    %89 = arith.addf %88, %87 : vector<8x256xf32>
    %90 = arith.divf %88, %89 : vector<8x256xf32>
    %91 = vector.extract_strided_slice %72 {offsets = [24, 0], sizes = [8, 256], strides = [1, 1]} : vector<32x256xf32> to vector<8x256xf32>
    %92 = math.tanh %91 : vector<8x256xf32>
    %c0_51 = arith.constant 0 : index
    %c0_52 = arith.constant 0 : index
    %c0_53 = arith.constant 0 : index
    %93 = vector.load %arg3[%c0_51, %c0_52, %c0_53] : memref<1x8x256xf32, #tpu.memory_space<vmem>>, vector<1x8x256xf32>
    %94 = vector.shape_cast %93 : vector<1x8x256xf32> to vector<8x256xf32>
    %95 = arith.mulf %84, %94 : vector<8x256xf32>
    %96 = arith.mulf %78, %92 : vector<8x256xf32>
    %97 = arith.addf %95, %96 : vector<8x256xf32>
    %98 = math.tanh %97 : vector<8x256xf32>
    %99 = arith.mulf %90, %98 : vector<8x256xf32>
    %c0_54 = arith.constant 0 : index
    %c0_55 = arith.constant 0 : index
    %c0_56 = arith.constant 0 : index
    %100 = vector.load %arg6[%c0_54, %c0_55, %c0_56] : memref<1x8x256xf32, #tpu.memory_space<vmem>>, vector<1x8x256xf32>
    %101 = vector.shape_cast %100 : vector<1x8x256xf32> to vector<8x256xf32>
    %102 = vector.shape_cast %99 : vector<8x256xf32> to vector<1x8x256xf32>
    tpu.vector_store %arg6[%c0_54, %c0_55, %c0_56], %102 {strides = array<i32>} : memref<1x8x256xf32, #tpu.memory_space<vmem>>, vector<1x8x256xf32>,
    %c0_57 = arith.constant 0 : index
    %c0_58 = arith.constant 0 : index
    %c0_59 = arith.constant 0 : index
    %103 = vector.load %arg7[%c0_57, %c0_58, %c0_59] : memref<1x8x256xf32, #tpu.memory_space<vmem>>, vector<1x8x256xf32>
    %104 = vector.shape_cast %103 : vector<1x8x256xf32> to vector<8x256xf32>
    %105 = vector.shape_cast %97 : vector<8x256xf32> to vector<1x8x256xf32>
    tpu.vector_store %arg7[%c0_57, %c0_58, %c0_59], %105 {strides = array<i32>} : memref<1x8x256xf32, #tpu.memory_space<vmem>>, vector<1x8x256xf32>,
    return
  }
  func.func @transform_0(%arg0: i32) -> (i32, i32, i32) {
    %c0_i32 = arith.constant 0 : i32
    %c0_i32_0 = arith.constant 0 : i32
    %c0_i32_1 = arith.constant 0 : i32
    return %arg0, %c0_i32, %c0_i32_0 : i32, i32, i32
  }
  func.func @transform_1(%arg0: i32) -> (i32, i32, i32) {
    %c0_i32 = arith.constant 0 : i32
    %c0_i32_0 = arith.constant 0 : i32
    %c0_i32_1 = arith.constant 0 : i32
    return %arg0, %c0_i32, %c0_i32_0 : i32, i32, i32
  }
  func.func @transform_2(%arg0: i32) -> (i32, i32, i32) {
    %c0_i32 = arith.constant 0 : i32
    %c0_i32_0 = arith.constant 0 : i32
    %c0_i32_1 = arith.constant 0 : i32
    return %arg0, %c0_i32, %c0_i32_0 : i32, i32, i32
  }
  func.func @transform_3(%arg0: i32) -> (i32, i32) {
    %c0_i32 = arith.constant 0 : i32
    %c0_i32_0 = arith.constant 0 : i32
    %c0_i32_1 = arith.constant 0 : i32
    return %c0_i32, %c0_i32_0 : i32, i32
  }
  func.func @transform_4(%arg0: i32) -> (i32, i32) {
    %c0_i32 = arith.constant 0 : i32
    %c0_i32_0 = arith.constant 0 : i32
    %c0_i32_1 = arith.constant 0 : i32
    return %c0_i32, %c0_i32_0 : i32, i32
  }
  func.func @transform_5(%arg0: i32) -> (i32, i32, i32) {
    %c0_i32 = arith.constant 0 : i32
    %c0_i32_0 = arith.constant 0 : i32
    %c0_i32_1 = arith.constant 0 : i32
    return %arg0, %c0_i32, %c0_i32_0 : i32, i32, i32
  }
  func.func @transform_6(%arg0: i32) -> (i32, i32, i32) {
    %c0_i32 = arith.constant 0 : i32
    %c0_i32_0 = arith.constant 0 : i32
    %c0_i32_1 = arith.constant 0 : i32
    return %arg0, %c0_i32, %c0_i32_0 : i32, i32, i32
  }
}

</mosaic_0001>

<bundles_post_ra>
// kernel: tpu_custom_call.1
= control target key start
LH: loop header
LB: loop body
LE: loop exit
PB: predicated region body
PF: predicated region fallthrough
CT: control target
= control target key end

     0   :  { %s2243_s0 = inlined_call_operand.hbm [shape: f32[2,4,256], index: 0, kind: input, shape index: {}]   ;;  %s2244_s1 = inlined_call_operand.vmem [shape: f32[2,8,256], index: 1, kind: input, shape index: {}]   ;;  %s2245_s2 = inlined_call_operand.hbm [shape: f32[2,8,256], index: 2, kind: input, shape index: {}]   ;;  %s2246_s3 = inlined_call_operand.hbm [shape: f32[32,144], index: 3, kind: input, shape index: {}]   ;;  %s2247_s4 = inlined_call_operand.vmem [shape: f32[32,1], index: 4, kind: input, shape index: {}]   ;;  %s2248_s5 = inlined_call_operand.hbm [shape: f32[2,8,256], index: 5, kind: output, shape index: {0}]   ;;  %s2249_s6 = inlined_call_operand.hbm [shape: f32[2,8,256], index: 6, kind: output, shape index: {1}]  }
   0x1   :  { %2254 = sst [smem:[#allocation18_spill]] %s2243_s0 }
   0x2   :  { %2255 = sst [smem:[#allocation19_spill]] %s2246_s3 }
   0x3   :  { %12 = vsyncpa [#allocation5], 0 }
   0x4   :  { %14 = vsyncpa [#allocation5 + $0x1], 0 }
   0x5   :  { %15 = vsyncpa [#allocation8], 0 }
   0x6   :  { %17 = vsyncpa [#allocation8 + $0x1], 0 }
   0x7   :  { %18 = vsyncpa [#allocation6], 0 }
   0x8   :  { %20 = vsyncpa [#allocation6 + $0x1], 0 }
   0x9   :  { %21 = vsyncpa [#allocation12], 0 }
   0xa   :  { %23 = vsyncpa [#allocation12 + $0x1], 0  ;;  %s1821_s21 = smov 0   ;;  %s1823_s22 = smov 0  }
   0xb   :  { %s1825_s23 = smov 0   ;;  %s1827_s24 = smov 0  }
   0xc LB: > { %s1842_s25 = sadd.s32 4294967295, %s1767_s24   ;;  %s1210_s26 = sadd.s32 4294967294, %s1767_s24   ;;  %s1767_s24 = sphi %s1827_s24, %s2276_s24   ;;  %s1763_s23 = sphi %s1825_s23, %s2275_s23   ;;  %s1759_s22 = sphi %s1823_s22, %s2274_s22   ;;  %s1755_s21 = sphi %s1821_s21, %s2273_s21  }
   0xd   : > { %p49_p0 = scmp.ne.s32.totalorder %s1759_s22, %s1755_s21  ;;  %p2250_p1 = scmp.eq.s32.totalorder %s1842_s25, 0 }
   0xe   : > { %p173_p3 = scmp.eq.s32.totalorder %s1210_s26, 1  ;;  %p1211_p5 = scmp.ge.s32.totalorder %s1767_s24, 1 }
   0xf   : > { %p1851_p4 = por %p2250_p1, %p49_p0  ;;  %p206_p7 = scmp.lt.s32.totalorder %s1767_s24, 3 }
  0x10   : > { %p1856_p6 = por %p173_p3, %p49_p0  ;;  %s1769_s30 = smov [#allocation9]  }
  0x11   : > { %s2256_s27 = scalar_select %p1851_p4, 1, 0 }
  0x12   : > { %s2257_s28 = scalar_select %p1856_p6, 1, 0 }
  0x13   : > { %p1861_p8 = pnand %p1211_p5, %p206_p7  ;;  %s218_s7 = sshll.u32 %s1769_s30, 4  ;;  %s1865_s7 = int_to_ptr.vmem [resolvable:$true] %s218_s7 }
  0x14   : > { %s1877_s9 = sadd.s32 1, %s1767_s24   ;;  %s36_s10 = sadd.s32 1, %s1763_s23 }
  0x15   : > { %s2258_s29 = scalar_select %p1861_p8, 1, 0 }
  0x16   : > { %p1321_p9 = pneg %p1861_p8  ;;  %s33_s11 = ssub.s32 %s1767_s24, %s1877_s9 }
  0x17   : > { %s2260_s3 = sld [smem:[#allocation19_spill]] }
  0x18   : > { %p1872_p11 = pnand %p1321_p9, %p2250_p1 }
  0x1a   : > { %p1575_p13 = pneg %p1872_p11 }
  0x1d   : > { %s1573_s14 = scalar_lea.hbm %s2260_s3, 1024 }
  0x1e   : > { %p1574_p12 = scmp.ne.s32.totalorder %s2260_s3, %s1573_s14  ;;  %p1580_p5 = scmp.lt.u32.totalorder %s1573_s14, %s2260_s3 }
  0x20   : > { %p1576_p0 = pnand %p1575_p13, %p1574_p12 }
  0x22   : > { %p1577_p3 = pneg %p1576_p0 }
  0x24   : > { %p1582_p7 = pnand %p1580_p5, %p1577_p3 }
  0x26   : > { %1585 = shalt.err (!%p1582_p7)
}
  0x27   : > { %s1586_s19 = scalar_lea.vmem %s1865_s7, 1024  ;;  %p1594_p2 = scmp.lt.s32.totalorder %s1865_s7, %s1865_s7 }
  0x28   : > { %p1587_p9 = scmp.ne.s32.totalorder %s1865_s7, %s1586_s19  ;;  %p1595_p6 = scmp.lt.s32.totalorder %s1586_s19, %s1586_s19 }
  0x2a   : > { %p1589_p10 = pnand %p1587_p9, %p1575_p13  ;;  %p1596_p4 = por %p1595_p6, %p1594_p2 }
  0x2c   : > { %p1590_p1 = pneg %p1589_p10 }
  0x2e   : > { %p1597_p8 = pnand %p1596_p4, %p1590_p1 }
  0x30   : > { %1600 = shalt.err (!%p1597_p8)
}
  0x31   : > { %s1770_s20 = smov 256   ;;  %s1771_s26 = smov 16  }
  0x32   : > { %1324 = dma.hbm_to_vmem [thread:$0]  (!%p1872_p11), %s2260_s3, 1024, %s1865_s7, [#allocation8], %s1770_s20, %s1770_s20, %s1771_s26  }
  0x33   : > { %p34_p1 = scmp.eq.s32.totalorder %s33_s11, 0  ;;  %p43_p2 = scmp.ne.s32.totalorder %s1763_s23, %s1759_s22 }
  0x34   : > { %p44_p4 = scmp.eq.s32.totalorder %s1767_s24, 0  ;;  %p1340_p6 = scmp.lt.s32.totalorder %s1767_s24, 2 }
  0x35   : > { %s1908_s13 = scalar_select %p34_p1, %s1763_s23, %s36_s10  }
  0x36   : > { %p45_p8 = por %p44_p4, %p43_p2  ;;  %p2261_p10 = scmp.eq.s32.totalorder %s1842_s25, 1 }
  0x37   : > { %s1917_s15 = sand.u32 1, %s1763_s23   ;;  %s1250_s8 = sshll.u32 %s1767_s24, 7 }
  0x38   : > { %p1912_p12 = por %p2261_p10, %p43_p2  ;;  %s1214_s16 = sshll.u32 %s1917_s15, 3 }
  0x39   : > { %s2263_s0 = sld [smem:[#allocation18_spill]]  ;;  %s239_s10 = scalar_lea.vmem [#allocation4], %s1214_s16 }
  0x3a   : > { %s2262_s14 = scalar_select %p1912_p12, 1, 0 }
  0x3b   : > { %s247_s18 = sshll.u32 %s239_s10, 4  ;;  %p1926_p11 = pnand %p1340_p6, %p45_p8  ;;  %s1930_s18 = int_to_ptr.vmem [resolvable:$true] %s247_s18 }
  0x3c   : > { %s236_s26 = scalar_lea.sflag [#allocation5], %s1917_s15 }
  0x3d   : > { %p1603_p0 = pneg %p1926_p11 }
  0x3f   : > { %s1924_s11 = scalar_lea.hbm %s2263_s0, %s1250_s8  ;;  %s1606_s16 = scalar_lea.hbm %s2263_s0, 256 }
  0x40   : > { %s1601_s30 = scalar_lea.hbm %s1924_s11, 128  ;;  %p1607_p7 = scmp.lt.u32.totalorder %s1924_s11, %s2263_s0 }
  0x41   : > { %p1602_p13 = scmp.ne.s32.totalorder %s1924_s11, %s1601_s30  ;;  %p1608_p9 = scmp.lt.u32.totalorder %s1606_s16, %s1601_s30 }
  0x42   : > { %p1610_p2 = scmp.lt.u32.totalorder %s1601_s30, %s1924_s11 }
  0x43   : > { %p1604_p3 = pnand %p1603_p0, %p1602_p13  ;;  %p1609_p1 = por %p1608_p9, %p1607_p7 }
  0x45   : > { %p1605_p5 = pneg %p1604_p3  ;;  %p1611_p4 = por %p1610_p2, %p1609_p1 }
  0x47   : > { %p1612_p6 = pnand %p1611_p4, %p1605_p5 }
  0x49   : > { %1615 = shalt.err (!%p1612_p6)
}
  0x4a   : > { %s1616_s10 = scalar_lea.vmem %s1930_s18, 128  ;;  %s1772_s12 = smov [#allocation4]  }
  0x4b   : > { %p1617_p8 = scmp.ne.s32.totalorder %s1930_s18, %s1616_s10  ;;  %s1621_s8 = sshll.u32 %s1772_s12, 4  ;;  %s1622_s8 = int_to_ptr.vmem [resolvable:$false] %s1621_s8 }
  0x4c   : > { %s1623_s7 = scalar_lea.vmem %s1622_s8, 256  ;;  %p1624_p3 = scmp.lt.s32.totalorder %s1930_s18, %s1622_s8 }
  0x4d   : > { %p1619_p10 = pnand %p1617_p8, %p1603_p0  ;;  %p1625_p7 = scmp.lt.s32.totalorder %s1623_s7, %s1616_s10 }
  0x4f   : > { %p1620_p13 = pneg %p1619_p10  ;;  %p1626_p9 = por %p1625_p7, %p1624_p3 }
  0x51   : > { %p1627_p1 = pnand %p1626_p9, %p1620_p13 }
  0x53   : > { %1630 = shalt.err (!%p1627_p1)
}
  0x54   : > { %1328 = dma.hbm_to_vmem [thread:$0]  (!%p1926_p11), %s1924_s11, 128, %s1930_s18, %s236_s26  }
  0x55   : > { %s1217_s30 = sshll.u32 %s1917_s15, 4  ;;  %s1251_s16 = sshll.u32 %s1767_s24, 8 }
  0x56   : > { %s1964_s20 = scalar_lea.hbm %s2245_s2, %s1251_s16  ;;  %s266_s10 = scalar_lea.vmem [#allocation7], %s1217_s30 }
  0x57   : > { %s274_s8 = sshll.u32 %s266_s10, 4  ;;  %s2265_s7 = sand.u32 1, %s1767_s24   ;;  %s275_s8 = int_to_ptr.vmem [resolvable:$true] %s274_s8 }
  0x58   : > { %s263_s0 = scalar_lea.sflag [#allocation8], %s2265_s7  ;;  %s1631_s3 = scalar_lea.hbm %s1964_s20, 256 }
  0x59   : > { %p1632_p5 = scmp.ne.s32.totalorder %s1964_s20, %s1631_s3  ;;  %s1636_s18 = scalar_lea.hbm %s2245_s2, 512 }
  0x5a   : > { %p1637_p6 = scmp.lt.u32.totalorder %s1964_s20, %s2245_s2  ;;  %p1638_p8 = scmp.lt.u32.totalorder %s1636_s18, %s1631_s3 }
  0x5b   : > { %p1634_p2 = pnand %p1632_p5, %p1603_p0  ;;  %p1640_p13 = scmp.lt.u32.totalorder %s1631_s3, %s1964_s20 }
  0x5c   : > { %p1639_p10 = por %p1638_p8, %p1637_p6 }
  0x5d   : > { %p1635_p4 = pneg %p1634_p2 }
  0x5e   : > { %p1641_p3 = por %p1640_p13, %p1639_p10 }
  0x60   : > { %p1642_p7 = pnand %p1641_p3, %p1635_p4 }
  0x62   : > { %1645 = shalt.err (!%p1642_p7)
}
  0x63   : > { %s1646_s30 = scalar_lea.vmem %s275_s8, 256  ;;  %s1773_s17 = smov [#allocation7]  }
  0x64   : > { %p1647_p9 = scmp.ne.s32.totalorder %s275_s8, %s1646_s30  ;;  %s1651_s12 = sshll.u32 %s1773_s17, 4  ;;  %s1652_s12 = int_to_ptr.vmem [resolvable:$false] %s1651_s12 }
  0x65   : > { %s1653_s10 = scalar_lea.vmem %s1652_s12, 512  ;;  %p1654_p2 = scmp.lt.s32.totalorder %s275_s8, %s1652_s12 }
  0x66   : > { %p1649_p1 = pnand %p1647_p9, %p1603_p0  ;;  %p1655_p12 = scmp.lt.s32.totalorder %s1653_s10, %s1646_s30 }
  0x68   : > { %p1650_p5 = pneg %p1649_p1  ;;  %p1656_p6 = por %p1655_p12, %p1654_p2 }
  0x6a   : > { %p1657_p8 = pnand %p1656_p6, %p1650_p5 }
  0x6c   : > { %1660 = shalt.err (!%p1657_p8)
}
  0x6d   : > { %1331 = dma.hbm_to_vmem [thread:$0]  (!%p1926_p11), %s1964_s20, 256, %s275_s8, %s263_s0  }
  0x6e   : > { %p2266_p4 = scmp.ne.s32.totalorder %s2258_s29, 0 }
  0x6f   : > { %s1990_s3 = sand.u32 (!%p2266_p4), 1, %s1759_s22   ;;  %p2267_p0 = scmp.ne.s32.totalorder (!%p2266_p4), %s2256_s27, 0 }
  0x70   : > { %283 = sbr.rel (%p2266_p4) target bundleno = 709 (0x2c5), region = 40  ;;  %s1221_s7 = sshll.u32 (!%p2266_p4), %s1990_s3, 3 }
  0x71   : > { %s286_s15 = scalar_lea.sflag (!%p2266_p4), [#allocation5], %s1990_s3  ;;  %s289_s11 = scalar_lea.vmem (!%p2266_p4), [#allocation4], %s1221_s7 }
  0x77   : > { %1734 = dma.done.wait (%p2267_p0), %s286_s15, 128  }
  0x78   : > { %1736 = vsyncadd (%p2267_p0), %s286_s15, 4294967168  ;;  %s294_s0 = sand.u32 1, %s1842_s25   ;;  %s2000_s29 = sshll.u32 %s1990_s3, 4 }
  0x79   : > { %s295_s19 = scalar_lea.sflag [#allocation8], %s294_s0  ;;  %s298_s20 = scalar_lea.vmem [#allocation7], %s2000_s29 }
  0x7a   : > { %1738 = dma.done.wait (%p2267_p0), %s295_s19, 256  }
  0x7b   : > { %1740 = vsyncadd (%p2267_p0), %s295_s19, 4294967040  ;;  %v369_v0 = vlaneseq  ;;  %p2268_p12 = scmp.eq.s32.totalorder %s1842_s25, 0 }
  0x7d   : > { %1742 = dma.done.wait (%p2268_p12), [#allocation8], 1024   ;;  %p2269_p11 = pmov %p2268_p12 }
  0x7e   : > { %vm351_vm0 = vcmask 1048440   ;;  %v1774_v1 = vmov 0.0   ;;  %v370_v2 = vand.u32 127, %v369_v0  ;;  %p346_p10 = scmp.lt.s32.totalorder %s1842_s25, 1  ;;  %v359_v7 = vld [vmem:[%s289_s11] sm:$0xff]  ;;  %vm354_vm5 = vcmask 138240  }
  0x7f   : > { %1744 = vsyncadd (%p2269_p11), [#allocation8], 4294966272  ;;  %357 = vst [vmem:[#allocation2 + $0x8] sm:$0xf0] %v1774_v1  ;;  %v361_v8 = vcombine.high %v359_v7, %v359_v7  ;;  %s1775_s30 = smov 111   ;;  %s1776_s17 = smov 127  }
  0x80   : > { %358 = vst [vmem:[#allocation2 + $0x10] sm:$0xf0] %v1774_v1  ;;  %352 = vst.msk [vmem:[#allocation2] sm:$0xff] %vm351_vm0, %v1774_v1  ;;  %v371_v3 = vadd.s32 128, %v370_v2  ;;  %v376_v4 = vand.u32 15, %v370_v2  ;;  %s347_s27 = scalar_select %p346_p10, %s1842_s25, 1 }
  0x81   : > { %353 = vst.msk [vmem:[#allocation2 + $0x20] sm:$0xff] %vm351_vm0, %v1774_v1  ;;  %363 = vst [vmem:[#allocation2 + $0x8] sm:$0xf] %v359_v7  ;;  %s1777_s12 = smov 113   ;;  %s1778_s10 = smov 1   ;;  %vm428_vm6 = vcmask 908288  }
  0x82   : > { %v383_v5 = vand.u32 15, %v371_v3  ;;  %vm396_vm1 = vcmp.ge.s32.totalorder %v376_v4, 1  ;;  %vm408_vm2 = vcmp.lt.s32.totalorder %v376_v4, 15  ;;  %s1252_s8 = sshll.u32 %s347_s27, 4  ;;  %356 = vst.msk [vmem:[#allocation2 + $0x38] sm:$0xff] %vm354_vm5, %v1774_v1  ;;  %355 = vst.msk [vmem:[#allocation2 + $0x18] sm:$0xff] %vm354_vm5, %v1774_v1 }
  0x83   : > { %v1228_v6 = vsel %vm396_vm1, 1.0, %v1774_v1  ;;  %s350_s16 = scalar_lea.vmem %s2244_s1, %s1252_s8  ;;  %v1230_v10 = vsel %vm408_vm2, 1.0, %v1774_v1  ;;  %364 = vst [vmem:[#allocation2 + $0x10] sm:$0xf] %v361_v8  ;;  %s1779_s7 = smov 15   ;;  %vm518_vm7 = vcmask 924672  }
  0x84   : > { %vm397_vm3 = vcmp.ge.s32.totalorder %v383_v5, 1  ;;  %vm409_vm4 = vcmp.lt.s32.totalorder %v383_v5, 15  ;;  %v2016_v12 = vld [vmem:[%s350_s16] sm:$0xff]  ;;  %v2018_v13 = vld [vmem:[%s350_s16 + $0x8] sm:$0xff]  ;;  %s1780_s15 = smov 17   ;;  %s1781_s11 = smov 16  }
  0x85   : > { %v1229_v9 = vsel %vm397_vm3, 1.0, %v1774_v1  ;;  %v1231_v11 = vsel %vm409_vm4, 1.0, %v1774_v1  ;;  %v1423_v19 = vpack.i.bf16 %v2018_v13, %v2016_v12  ;;  %vm570_vm8 = vcmask 1039360   ;;  %s1782_s0 = smov 112   ;;  %p2270_p3 = scmp.ne.s32.totalorder %s2262_s14, 0 }
  0x86   : > { %v1388_v14 = vpack.i.bf16 %v1229_v9, %v1228_v6  ;;  %v1393_v15 = vpack.i.bf16 %v1231_v11, %v1230_v10  ;;  %vm599_vm9 = vcmask 7168   ;;  %vm547_vm10 = vcmask 121856   ;;  %s1784_s27 = smov [#allocation11]  }
  0x87   : > { %v469_v16 = vld [vmem:[#allocation2] sm:$0xff]  ;;  %vm493_vm11 = vcmask 130048   ;;  %vm744_vm12 = vcmask 916480   ;;  %s1665_s8 = sshll.u32 %s1784_s27, 4  ;;  %s1666_s8 = int_to_ptr.vmem [resolvable:$false] %s1665_s8 }
  0x88   : > { %1389 = vrot.lane.b32.xlu0 %v1388_v14, %s1775_s30  ;;  %1399 = vrot.lane.b32.xlu1 %v1388_v14, %s1776_s17  ;;  %v472_v17 = vld [vmem:[#allocation2 + $0x20] sm:$0xff]  ;;  %v2030_v20 = vld [vmem:[#allocation2 + $0x8] sm:$0xff]  ;;  %s1667_s18 = scalar_lea.vmem %s1666_s8, 512 }
  0x89   : > { %v1418_v18 = vpack.i.bf16 %v472_v17, %v469_v16  ;;  %v625_v6 = vld [vmem:[#allocation2 + $0x38] sm:$0xff] }
  0x8a   : > { %v2032_v21 = vld [vmem:[#allocation2 + $0x10] sm:$0xff] }
  0x8b   : > { %v1428_v22 = vpack.i.bf16 %v2032_v21, %v2030_v20 }
  0x8c   : > { %1394 = vrot.lane.b32.xlu0 %v1393_v15, %s1777_s12  ;;  %1404 = vrot.lane.b32.xlu1 %v1393_v15, %s1778_s10 }
  0x90   : > { %1409 = vrot.lane.b32.xlu0 %v1388_v14, %s1779_s7  ;;  %1414 = vrot.lane.b32.xlu1 %v1393_v15, %s1780_s15 }
  0x94   : > { %1419 = vrot.lane.b32.xlu1 %v1418_v18, %s1781_s11  ;;  %1424 = vrot.lane.b32.xlu0 %v1423_v19, %s1781_s11  ;;  %v722_v18 = vld [vmem:[#allocation2 + $0x18] sm:$0xff] }
  0x98   : > { %1429 = vrot.lane.b32.xlu1 %v1428_v22, %s1781_s11 }
  0xfa   : > { %v1390_v23 = vpop.permute.xlu0 %1389  ;;  %v1400_v24 = vpop.permute.xlu1 %1399 }
  0xfb   : > { %v1392_v25 = vunpack.i.h.bf16 %v1390_v23  ;;  %v1391_v26 = vunpack.i.l.bf16 %v1390_v23  ;;  %v1401_v27 = vunpack.i.l.bf16 %v1400_v24  ;;  %v1402_v40 = vunpack.i.h.bf16 %v1400_v24 }
  0xfd   : > { %v429_v28 = vsel %vm428_vm6, %v1391_v26, %v1392_v25  ;;  %v433_v29 = vmul.f32 %v1391_v26, %v469_v16  ;;  %v436_v30 = vmul.f32 %v1391_v26, %v472_v17  ;;  %v438_v33 = vmul.f32 %v1392_v25, %v2018_v13 }
  0xfe   : > { %v1395_v31 = vpop.permute.xlu0 %1394  ;;  %v437_v32 = vmul.f32 %v429_v28, %v2016_v12  ;;  %v1405_v34 = vpop.permute.xlu1 %1404  ;;  %v575_v35 = vmul.f32 %v1401_v27, %v469_v16  ;;  %v578_v36 = vmul.f32 %v1401_v27, %v472_v17  ;;  %v434_v48 = vmul.f32 %v2030_v20, %v429_v28 }
  0xff   : > { %v1397_v37 = vunpack.i.h.bf16 %v1395_v31  ;;  %v1396_v38 = vunpack.i.l.bf16 %v1395_v31  ;;  %v1433_v39 = vpack.i.bf16 %v436_v30, %v433_v29  ;;  %v1406_v43 = vunpack.i.l.bf16 %v1405_v34 }
 0x100   : > { %v1448_v41 = vpack.i.bf16 %v438_v33, %v437_v32  ;;  %v1453_v46 = vpack.i.bf16 %v578_v36, %v575_v35  ;;  %v435_v49 = vmul.f32 %v1392_v25, %v2032_v21  ;;  %v571_v53 = vsel %vm570_vm8, %v1401_v27, %v1402_v40 }
 0x101   : > { %v519_v42 = vsel %vm518_vm7, %v1396_v38, %v1397_v37  ;;  %1434 = vrot.lane.b32.xlu0 %v1433_v39, %s1780_s15  ;;  %v523_v44 = vmul.f32 %v1396_v38, %v469_v16  ;;  %v526_v45 = vmul.f32 %v1396_v38, %v472_v17  ;;  %v528_v52 = vmul.f32 %v1397_v37, %v2018_v13 }
 0x102   : > { %1449 = vrot.lane.b32.xlu1 %v1448_v41, %s1780_s15  ;;  %v1410_v50 = vpop.permute.xlu0 %1409  ;;  %v527_v51 = vmul.f32 %v519_v42, %v2016_v12  ;;  %v634_v54 = vmul.f32 %v1406_v43, %v2030_v20  ;;  %v637_v55 = vmul.f32 %v1406_v43, %v2016_v12  ;;  %v1443_v57 = vpack.i.bf16 %v435_v49, %v434_v48  ;;  %v1415_v15 = vpop.permute.xlu1 %1414  ;;  %v852_v48 = vld [vmem:[%s2247_s4 + $0x8] sm:$0xff] }
 0x103   : > { %v1438_v47 = vpack.i.bf16 %v526_v45, %v523_v44  ;;  %v1411_v56 = vunpack.i.l.bf16 %v1410_v50  ;;  %v576_v59 = vmul.f32 %v571_v53, %v2030_v20  ;;  %v577_v60 = vmul.f32 %v1402_v40, %v2032_v21  ;;  %v812_v44 = vld [vmem:[#allocation9 + $0x28] sm:$0xff] }
 0x104   : > { %v1468_v58 = vpack.i.bf16 %v528_v52, %v527_v51  ;;  %v1407_v61 = vunpack.i.h.bf16 %v1405_v34  ;;  %v1458_v62 = vpack.i.bf16 %v637_v55, %v634_v54  ;;  %v524_v1 = vmul.f32 %v519_v42, %v2030_v20  ;;  %1234 = vmatprep.mubr.msk.f32.mxu1 %vm493_vm11, %v812_v44  ;;  %v853_v51 = vld [vmem:[%s2247_s4 + $0x10] sm:$0xff]  ;;  %v854_v52 = vld [vmem:[%s2247_s4 + $0x18] sm:$0xff] }
 0x105   : > { %1439 = vrot.lane.b32.xlu0 %v1438_v47, %s1779_s7  ;;  %v684_v63 = vmul.f32 %v1411_v56, %v2030_v20  ;;  %v687_v0 = vmul.f32 %v1411_v56, %v2016_v12  ;;  %v525_v2 = vmul.f32 %v1397_v37, %v2032_v21  ;;  %v1473_v3 = vpack.i.bf16 %v577_v60, %v576_v59 }
 0x106   : > { %1454 = vrot.lane.b32.xlu1 %v1453_v46, %s1778_s10  ;;  %v630_v4 = vsel %vm599_vm9, %v1406_v43, %v1407_v61  ;;  %v1412_v5 = vunpack.i.h.bf16 %v1410_v50  ;;  %v579_v9 = vmul.f32 %v571_v53, %v2016_v12  ;;  %v580_v10 = vmul.f32 %v1402_v40, %v2018_v13  ;;  %v808_v43 = vld [vmem:[#allocation9 + $0x8] sm:$0xff]  ;;  %v851_v50 = vld [vmem:[%s2247_s4] sm:$0xff]  ;;  %v1420_v53 = vpop.permute.xlu1 %1419  ;;  %v1425_v54 = vpop.permute.xlu0 %1424 }
 0x107   : > { %v1478_v7 = vpack.i.bf16 %v687_v0, %v684_v63  ;;  %v1463_v8 = vpack.i.bf16 %v525_v2, %v524_v1  ;;  %v638_v11 = vmul.f32 %v630_v4, %v2018_v13  ;;  %v639_v14 = vmul.f32 %v1407_v61, %v625_v6  ;;  %1232 = vmatprep.mubr.msk.f32.mxu0 %vm493_vm11, %v808_v43 }
 0x108   : > { %v680_v16 = vsel %vm547_vm10, %v1411_v56, %v1412_v5  ;;  %v1483_v17 = vpack.i.bf16 %v580_v10, %v579_v9  ;;  %v1417_v19 = vunpack.i.h.bf16 %v1415_v15  ;;  %v1416_v22 = vunpack.i.l.bf16 %v1415_v15 }
 0x109   : > { %1444 = vrot.lane.b32.xlu0 %v1443_v57, %s1780_s15  ;;  %v1498_v23 = vpack.i.bf16 %v639_v14, %v638_v11  ;;  %v685_v24 = vmul.f32 %v680_v16, %v2032_v21  ;;  %v686_v25 = vmul.f32 %v1412_v5, %v722_v18  ;;  %v1488_v26 = vpack.i.bf16 %v722_v18, %v2032_v21 }
 0x10a   : > { %1469 = vrot.lane.b32.xlu1 %v1468_v58, %s1779_s7  ;;  %v767_v27 = vsel %vm354_vm5, %v1416_v22, %v1417_v19  ;;  %v635_v28 = vmul.f32 %v630_v4, %v2032_v21  ;;  %v636_v29 = vmul.f32 %v1407_v61, %v722_v18  ;;  %v1508_v31 = vpack.i.bf16 %v625_v6, %v2018_v13  ;;  %v1430_v55 = vpop.permute.xlu1 %1429 }
 0x10b   : > { %v1503_v30 = vpack.i.bf16 %v686_v25, %v685_v24  ;;  %v772_v32 = vmul.f32 %v767_v27, %v2032_v21  ;;  %v773_v33 = vmul.f32 %v1417_v19, %v722_v18  ;;  %v688_v35 = vmul.f32 %v680_v16, %v2018_v13 }
 0x10c   : > { %v1493_v34 = vpack.i.bf16 %v636_v29, %v635_v28  ;;  %v689_v36 = vmul.f32 %v1412_v5, %v625_v6  ;;  %v771_v38 = vmul.f32 %v1416_v22, %v2030_v20  ;;  %v774_v39 = vmul.f32 %v1416_v22, %v2016_v12 }
 0x10d   : > { %1459 = vrot.lane.b32.xlu0 %v1458_v62, %s1776_s17  ;;  %v1523_v37 = vpack.i.bf16 %v773_v33, %v772_v32  ;;  %v1518_v41 = vpack.i.bf16 %v2016_v12, %v2030_v20  ;;  %v775_v45 = vmul.f32 %v767_v27, %v2018_v13  ;;  %v776_v46 = vmul.f32 %v1417_v19, %v625_v6 }
 0x10e   : > { %1474 = vrot.lane.b32.xlu1 %v1473_v3, %s1778_s10  ;;  %v1513_v40 = vpack.i.bf16 %v689_v36, %v688_v35  ;;  %v1533_v42 = vpack.i.bf16 %v774_v39, %v771_v38  ;;  %v1783_v49 = vmov 0   ;;  %v1427_v60 = vunpack.i.h.bf16 %v1425_v54 }
 0x10f   : > { %v1528_v47 = vpack.i.bf16 %v776_v46, %v775_v45  ;;  %1538 = vset.pattern.permute.xlu0 %v1783_v49  ;;  %1539 = vset.pattern.permute.xlu1 %v1783_v49  ;;  %v1426_v61 = vunpack.i.l.bf16 %v1425_v54  ;;  %v1432_v62 = vunpack.i.h.bf16 %v1430_v55  ;;  %v1431_v63 = vunpack.i.l.bf16 %v1430_v55 }
 0x110   : > { %v1422_v3 = vunpack.i.h.bf16 %v1420_v53  ;;  %v1421_v5 = vunpack.i.l.bf16 %v1420_v53 }
 0x111   : > { %1464 = vrot.lane.b32.xlu0 %v1463_v8, %s1779_s7  ;;  %v495_v10 = vsel %vm493_vm11, %v1431_v63, %v1432_v62  ;;  %v497_v11 = vsel %vm493_vm11, %v1426_v61, %v1427_v60 }
 0x112   : > { %1479 = vrot.lane.b32.xlu1 %v1478_v7, %s1777_s12  ;;  %v494_v24 = vsel %vm493_vm11, %v1421_v5, %v1431_v63  ;;  %v496_v25 = vsel %vm493_vm11, %v1422_v3, %v1426_v61  ;;  %v1259_v28 = vpack.c.bf16 %v497_v11, %v495_v10  ;;  %v1273_v61 = vpack.c.bf16 %v2016_v12, %v2030_v20 }
 0x115   : > { %1484 = vrot.lane.b32.xlu0 %v1483_v17, %s1778_s10  ;;  %s345_s10 = scalar_lea.vmem [#allocation11], %s2000_s29 }
 0x116   : > { %1499 = vrot.lane.b32.xlu1 %v1498_v23, %s1776_s17  ;;  %s1064_s7 = sshll.u32 %s345_s10, 4  ;;  %s2169_s7 = int_to_ptr.vmem [resolvable:$true] %s1064_s7 }
 0x117   : > { %s1661_s19 = scalar_lea.vmem %s2169_s7, 256  ;;  %p1668_p1 = scmp.lt.s32.totalorder %s2169_s7, %s1666_s8 }
 0x118   : > { %p1662_p13 = scmp.ne.s32.totalorder %s2169_s7, %s1661_s19  ;;  %p1669_p5 = scmp.lt.s32.totalorder %s1667_s18, %s1661_s19 }
 0x119   : > { %1489 = vrot.lane.b32.xlu0 %v1488_v26, %s1782_s0 }
 0x11a   : > { %1504 = vrot.lane.b32.xlu1 %v1503_v30, %s1777_s12  ;;  %v1261_v30 = vpack.c.bf16 %v496_v25, %v494_v24  ;;  %p1663_p7 = pnand %p1662_p13, %p2270_p3  ;;  %p1670_p2 = por %p1669_p5, %p1668_p1 }
 0x11c   : > { %p1664_p9 = pneg %p1663_p7 }
 0x11d   : > { %1494 = vrot.lane.b32.xlu0 %v1493_v34, %s1776_s17 }
 0x11e   : > { %1509 = vrot.lane.b32.xlu1 %v1508_v31, %s1782_s0  ;;  %p1671_p6 = pnand %p1670_p2, %p1664_p9 }
 0x121   : > { %1514 = vrot.lane.b32.xlu0 %v1513_v40, %s1777_s12 }
 0x122   : > { %1524 = vrot.lane.b32.xlu1 %v1523_v37, %s1775_s30 }
 0x125   : > { %1519 = vrot.lane.b32.xlu0 %v1518_v41, %s1782_s0 }
 0x126   : > { %1534 = vrot.lane.b32.xlu1 %v1533_v42, %s1775_s30 }
 0x129   : > { %1529 = vrot.lane.b32.xlu0 %v1528_v47, %s1775_s30  ;;  %s1253_s30 = sshll.u32 %s1842_s25, 8 }
 0x12a   : > { %862 = vperm.xlu1 %1539, %v852_v48   ;;  %s2167_s0 = scalar_lea.hbm %s2249_s6, %s1253_s30 }
 0x12d   : > { %857 = vperm.xlu0 %1538, %v851_v50  }
 0x12e   : > { %867 = vperm.xlu1 %1539, %v853_v51  }
 0x131   : > { %872 = vperm.xlu0 %1538, %v854_v52  }
 0x173   : > { %v1435_v56 = vpop.permute.xlu0 %1434 }
 0x174   : > { %v1450_v57 = vpop.permute.xlu1 %1449  ;;  %v1437_v0 = vunpack.i.h.bf16 %v1435_v56  ;;  %v1436_v6 = vunpack.i.l.bf16 %v1435_v56 }
 0x175   : > { %v1452_v1 = vunpack.i.h.bf16 %v1450_v57  ;;  %v1451_v2 = vunpack.i.l.bf16 %v1450_v57  ;;  %v1271_v57 = vpack.c.bf16 %v2018_v13, %v2032_v21 }
 0x177   : > { %v1440_v58 = vpop.permute.xlu0 %1439  ;;  %v460_v15 = vsel %vm354_vm5, %v1451_v2, %v1452_v1  ;;  %v459_v17 = vsel %vm354_vm5, %v1437_v0, %v1451_v2 }
 0x178   : > { %v2102_v59 = vpop.permute.xlu1 %1454  ;;  %v1442_v31 = vunpack.i.h.bf16 %v1440_v58  ;;  %v1441_v32 = vunpack.i.l.bf16 %v1440_v58 }
 0x179   : > { %v1457_v45 = vunpack.i.h.bf16 %v2102_v59  ;;  %v1456_v46 = vunpack.i.l.bf16 %v2102_v59 }
 0x17b   : > { %v1445_v4 = vpop.permute.xlu0 %1444 }
 0x17c   : > { %v1447_v7 = vunpack.i.h.bf16 %v1445_v4  ;;  %v1446_v8 = vunpack.i.l.bf16 %v1445_v4  ;;  %v1470_v9 = vpop.permute.xlu1 %1469 }
 0x17d   : > { %v1472_v26 = vunpack.i.h.bf16 %v1470_v9  ;;  %v1471_v27 = vunpack.i.l.bf16 %v1470_v9 }
 0x17e   : > { %v458_v14 = vsel %vm354_vm5, %v1446_v8, %v1447_v7  ;;  %v457_v16 = vsel %vm354_vm5, %v1436_v6, %v1446_v8 }
 0x17f   : > { %v2110_v18 = vpop.permute.xlu0 %1459  ;;  %v1255_v19 = vpack.c.bf16 %v460_v15, %v458_v14  ;;  %v1257_v22 = vpack.c.bf16 %v459_v17, %v457_v16  ;;  %v551_v38 = vsel %vm547_vm10, %v1471_v27, %v1472_v26  ;;  %v550_v41 = vsel %vm547_vm10, %v1442_v31, %v1471_v27 }
 0x180   : > { %v1475_v23 = vpop.permute.xlu1 %1474  ;;  %v1462_v62 = vunpack.i.h.bf16 %v2110_v18  ;;  %v1461_v0 = vunpack.i.l.bf16 %v2110_v18 }
 0x181   : > { %1256 = vmatprep.subr.bf16.mxu0 %v1255_v19  ;;  %1291 = vmatprep.subr.bf16.mxu1 %v1255_v19  ;;  %v1477_v36 = vunpack.i.h.bf16 %v1475_v23  ;;  %v1476_v37 = vunpack.i.l.bf16 %v1475_v23 }
 0x182   : > { %1258 = vmatpush1.bf16.msra.mxu0 %v1257_v22  ;;  %1300 = vmatpush1.bf16.msra.mxu1 %v1257_v22 }
 0x183   : > { %v1465_v29 = vpop.permute.xlu0 %1464  ;;  %1260 = vmatprep.subr.bf16.mxu0 %v1259_v28  ;;  %1292 = vmatprep.subr.bf16.mxu1 %v1259_v28  ;;  %v601_v50 = vsel %vm599_vm9, %v1476_v37, %v1477_v36  ;;  %v600_v52 = vsel %vm599_vm9, %v1456_v46, %v1476_v37 }
 0x184   : > { %v1467_v33 = vunpack.i.h.bf16 %v1465_v29  ;;  %v1466_v34 = vunpack.i.l.bf16 %v1465_v29  ;;  %v2114_v35 = vpop.permute.xlu1 %1479 }
 0x185   : > { %v1482_v8 = vunpack.i.h.bf16 %v2114_v35  ;;  %v1481_v9 = vunpack.i.l.bf16 %v2114_v35 }
 0x186   : > { %1262 = vmatpush1.bf16.msra.mxu0 %v1261_v30  ;;  %1301 = vmatpush1.bf16.msra.mxu1 %v1261_v30  ;;  %v549_v39 = vsel %vm547_vm10, %v1466_v34, %v1467_v33  ;;  %v548_v40 = vsel %vm547_vm10, %v1441_v32, %v1466_v34 }
 0x187   : > { %v1485_v42 = vpop.permute.xlu0 %1484  ;;  %v1263_v43 = vpack.c.bf16 %v551_v38, %v549_v39  ;;  %v1265_v44 = vpack.c.bf16 %v550_v41, %v548_v40 }
 0x188   : > { %v1487_v47 = vunpack.i.h.bf16 %v1485_v42  ;;  %v1486_v48 = vunpack.i.l.bf16 %v1485_v42  ;;  %v1500_v49 = vpop.permute.xlu1 %1499 }
 0x189   : > { %1264 = vmatprep.subr.bf16.mxu0 %v1263_v43  ;;  %1293 = vmatprep.subr.bf16.mxu1 %v1263_v43  ;;  %v1502_v59 = vunpack.i.h.bf16 %v1500_v49  ;;  %v1501_v60 = vunpack.i.l.bf16 %v1500_v49 }
 0x18a   : > { %1266 = vmatpush1.bf16.msra.mxu0 %v1265_v44  ;;  %1302 = vmatpush1.bf16.msra.mxu1 %v1265_v44  ;;  %v603_v51 = vsel %vm599_vm9, %v1486_v48, %v1487_v47  ;;  %v602_v53 = vsel %vm599_vm9, %v1457_v45, %v1486_v48 }
 0x18b   : > { %v2126_v54 = vpop.permute.xlu0 %1489  ;;  %v1267_v55 = vpack.c.bf16 %v603_v51, %v601_v50  ;;  %v1269_v56 = vpack.c.bf16 %v602_v53, %v600_v52  ;;  %v661_v4 = vsel %vm570_vm8, %v1501_v60, %v1502_v59  ;;  %v660_v5 = vsel %vm570_vm8, %v1462_v62, %v1501_v60  ;;  %v807_v51 = vld [vmem:[#allocation9] sm:$0xff]  ;;  %v810_v53 = vld [vmem:[#allocation9 + $0x18] sm:$0xff] }
 0x18c   : > { %v1505_v58 = vpop.permute.xlu1 %1504  ;;  %v1492_v15 = vunpack.i.h.bf16 %v2126_v54  ;;  %v1491_v16 = vunpack.i.l.bf16 %v2126_v54  ;;  %v811_v52 = vld [vmem:[#allocation9 + $0x20] sm:$0xff]  ;;  %v814_v54 = vld [vmem:[#allocation9 + $0x38] sm:$0xff] }
 0x18d   : > { %1268 = vmatprep.subr.bf16.mxu0 %v1267_v55  ;;  %1294 = vmatprep.subr.bf16.mxu1 %v1267_v55  ;;  %v1507_v21 = vunpack.i.h.bf16 %v1505_v58  ;;  %v1506_v3 = vunpack.i.l.bf16 %v1505_v58  ;;  %v809_v55 = vld [vmem:[#allocation9 + $0x10] sm:$0xff] }
 0x18e   : > { %1270 = vmatpush1.bf16.msra.mxu0 %v1269_v56  ;;  %1303 = vmatpush1.bf16.msra.mxu1 %v1269_v56  ;;  %v746_v33 = vsel %vm744_vm12, %v1491_v16, %v1492_v15  ;;  %v813_v56 = vld [vmem:[#allocation9 + $0x30] sm:$0xff] }
 0x18f   : > { %v1495_v63 = vpop.permute.xlu0 %1494  ;;  %1272 = vmatprep.subr.bf16.mxu0 %v1271_v57  ;;  %1295 = vmatprep.subr.bf16.mxu1 %v1271_v57  ;;  %v709_v22 = vsel %vm518_vm7, %v1506_v3, %v1507_v21  ;;  %v708_v23 = vsel %vm518_vm7, %v1481_v9, %v1506_v3 }
 0x190   : > { %v1497_v1 = vunpack.i.h.bf16 %v1495_v63  ;;  %v1496_v2 = vunpack.i.l.bf16 %v1495_v63  ;;  %v1510_v13 = vpop.permute.xlu1 %1509 }
 0x191   : > { %v1512_v6 = vunpack.i.h.bf16 %v1510_v13  ;;  %v1511_v7 = vunpack.i.l.bf16 %v1510_v13 }
 0x192   : > { %1274 = vmatpush1.bf16.msra.mxu0 %v1273_v61  ;;  %1304 = vmatpush1.bf16.msra.mxu1 %v1273_v61  ;;  %v659_v12 = vsel %vm570_vm8, %v1496_v2, %v1497_v1  ;;  %v658_v20 = vsel %vm570_vm8, %v1461_v0, %v1496_v2 }
 0x193   : > { %v1515_v10 = vpop.permute.xlu0 %1514  ;;  %v1275_v11 = vpack.c.bf16 %v661_v4, %v659_v12  ;;  %v1277_v14 = vpack.c.bf16 %v660_v5, %v658_v20  ;;  %v748_v26 = vsel %vm744_vm12, %v1511_v7, %v1512_v6 }
 0x194   : > { %v1517_v17 = vunpack.i.h.bf16 %v1515_v10  ;;  %v1516_v18 = vunpack.i.l.bf16 %v1515_v10  ;;  %v1525_v19 = vpop.permute.xlu1 %1524  ;;  %v1283_v36 = vpack.c.bf16 %v748_v26, %v746_v33  ;;  %v1014_v33 = vld [vmem:[%s298_s20] sm:$0xff] }
 0x195   : > { %1276 = vmatprep.subr.bf16.mxu0 %v1275_v11  ;;  %1296 = vmatprep.subr.bf16.mxu1 %v1275_v11  ;;  %v1527_v34 = vunpack.i.h.bf16 %v1525_v19  ;;  %v1526_v35 = vunpack.i.l.bf16 %v1525_v19 }
 0x196   : > { %1278 = vmatpush1.bf16.msra.mxu0 %v1277_v14  ;;  %1305 = vmatpush1.bf16.msra.mxu1 %v1277_v14  ;;  %v711_v24 = vsel %vm518_vm7, %v1516_v18, %v1517_v17  ;;  %v710_v25 = vsel %vm518_vm7, %v1482_v8, %v1516_v18 }
 0x197   : > { %v1520_v27 = vpop.permute.xlu0 %1519  ;;  %v1279_v28 = vpack.c.bf16 %v711_v24, %v709_v22  ;;  %v1281_v29 = vpack.c.bf16 %v710_v25, %v708_v23  ;;  %v796_v45 = vsel %vm428_vm6, %v1526_v35, %v1527_v34 }
 0x198   : > { %v1522_v30 = vunpack.i.h.bf16 %v1520_v27  ;;  %v1521_v31 = vunpack.i.l.bf16 %v1520_v27  ;;  %v1535_v32 = vpop.permute.xlu1 %1534 }
 0x199   : > { %1280 = vmatprep.subr.bf16.mxu0 %v1279_v28  ;;  %1297 = vmatprep.subr.bf16.mxu1 %v1279_v28  ;;  %v1536_v37 = vunpack.i.l.bf16 %v1535_v32  ;;  %v1537_v42 = vunpack.i.h.bf16 %v1535_v32 }
 0x19a   : > { %1282 = vmatpush1.bf16.msra.mxu0 %v1281_v29  ;;  %1306 = vmatpush1.bf16.msra.mxu1 %v1281_v29  ;;  %v745_v38 = vsel %vm744_vm12, %v1521_v31, %v1491_v16  ;;  %v747_v39 = vsel %vm744_vm12, %v1522_v30, %v1511_v7 }
 0x19b   : > { %v1530_v40 = vpop.permute.xlu0 %1529  ;;  %1284 = vmatprep.subr.bf16.mxu0 %v1283_v36  ;;  %1298 = vmatprep.subr.bf16.mxu1 %v1283_v36  ;;  %v1285_v41 = vpack.c.bf16 %v747_v39, %v745_v38  ;;  %v795_v47 = vsel %vm428_vm6, %v1536_v37, %v1526_v35  ;;  %v1015_v38 = vld [vmem:[%s298_s20 + $0x8] sm:$0xff]  ;;  %s1036_s20 = scalar_lea.sflag [#allocation12], %s1990_s3 }
 0x19c   : > { %v1532_v43 = vunpack.i.h.bf16 %v1530_v40  ;;  %v1531_v44 = vunpack.i.l.bf16 %v1530_v40 }
 0x19e   : > { %1286 = vmatpush1.bf16.msra.mxu0 %v1285_v41  ;;  %1307 = vmatpush1.bf16.msra.mxu1 %v1285_v41  ;;  %v798_v46 = vsel %vm428_vm6, %v1531_v44, %v1532_v43  ;;  %v797_v48 = vsel %vm428_vm6, %v1537_v42, %v1531_v44 }
 0x19f   : > { %v1287_v49 = vpack.c.bf16 %v798_v46, %v796_v45  ;;  %v1289_v50 = vpack.c.bf16 %v797_v48, %v795_v47 }
 0x1a1   : > { %1288 = vmatprep.subr.bf16.mxu0 %v1287_v49  ;;  %1299 = vmatprep.subr.bf16.mxu1 %v1287_v49 }
 0x1a2   : > { %1290 = vmatpush1.bf16.msra.mxu0 %v1289_v50  ;;  %1308 = vmatpush1.bf16.msra.mxu1 %v1289_v50 }
 0x1a5   : > { %952 = vmatmul.mubr.f32.vlgmr.msra.gmra.mrb[0].mxu0 %v807_v51  ;;  %964 = vmatmul.mubr.f32.vlgmr.msra.gmra.mrb[0].mxu1 %v811_v52 }
 0x1a6   : > { %1233 = vmatprep.mubr.msk.f32.mxu0 %vm493_vm11, %v810_v53  ;;  %1235 = vmatprep.mubr.msk.f32.mxu1 %vm493_vm11, %v814_v54 }
 0x1a9   : > { %958 = vmatmul.mubr.f32.gmra.mrb[2].mxu0 %v809_v55  ;;  %970 = vmatmul.mubr.f32.gmra.mrb[2].mxu1 %v813_v56  ;;  %v863_v57 = vpop.permute.xlu1 %862 }
 0x1ac   : > { %v858_v58 = vpop.permute.xlu0 %857 }
 0x1ad   : > { %v868_v2 = vpop.permute.xlu1 %867 }
 0x1b0   : > { %v873_v9 = vpop.permute.xlu0 %872 }
 0x278   : > { %v953_v59 = vpop.f32.mrb[0].mxu0  ;;  %v965_v60 = vpop.f32.mrb[0].mxu1 }
 0x279   : > { %v954_v61 = vadd.f32 %v953_v59, %v858_v58  ;;  %v955_v62 = vpop.f32.mrb[1].mxu0  ;;  %v967_v63 = vpop.f32.mrb[1].mxu1  ;;  %v966_v20 = vadd.f32 %v965_v60, %v868_v2 }
 0x27a   : > { %v956_v0 = vadd.f32 %v955_v62, %v858_v58  ;;  %v968_v14 = vadd.f32 %v967_v63, %v868_v2 }
 0x27b   : > { %v1236_v1 = vmul.f32 -1.442695, %v954_v61  ;;  %v1240_v10 = vmul.f32 -1.442695, %v966_v20 }
 0x27c   : > { %v1237_v13 = vmul.f32 -1.442695, %v956_v0  ;;  %v959_v21 = vpop.f32.mrb[2].mxu0  ;;  %v971_v3 = vpop.f32.mrb[2].mxu1  ;;  %v1241_v22 = vmul.f32 -1.442695, %v968_v14 }
 0x27d   : > { %1541 = vpow2.f32 %v1236_v1  ;;  %v960_v4 = vadd.f32 %v959_v21, %v863_v57  ;;  %v961_v5 = vpop.f32.mrb[3].mxu0  ;;  %v973_v6 = vpop.f32.mrb[3].mxu1  ;;  %v972_v11 = vadd.f32 %v971_v3, %v873_v9 }
 0x27e   : > { %1543 = vpow2.f32 %v1237_v13  ;;  %v962_v7 = vadd.f32 %v961_v5, %v863_v57  ;;  %v974_v15 = vadd.f32 %v973_v6, %v873_v9 }
 0x27f   : > { %v1238_v12 = vmul.f32 -1.442695, %v960_v4 }
 0x280   : > { %v1239_v8 = vmul.f32 -1.442695, %v962_v7 }
 0x281   : > { %1545 = vpow2.f32 %v1238_v12 }
 0x282   : > { %1547 = vpow2.f32 %v1239_v8 }
 0x283   : > { %1549 = vpow2.f32 %v1240_v10 }
 0x284   : > { %1551 = vtanh.f32 %v972_v11 }
 0x285   : > { %1553 = vtanh.f32 %v974_v15 }
 0x287   : > { %v1542_v16 = vpop.eup %1541 }
 0x288   : > { %v1544_v17 = vpop.eup %1543  ;;  %v982_v18 = vadd.f32 1.0, %v1542_v16 }
 0x289   : > { %v983_v19 = vadd.f32 1.0, %v1544_v17 }
 0x28a   : > { %1555 = vrcp.f32 %v982_v18 }
 0x28b   : > { %v1546_v23 = vpop.eup %1545  ;;  %1557 = vrcp.f32 %v983_v19 }
 0x28c   : > { %v994_v24 = vadd.f32 1.0, %v1546_v23  ;;  %v1548_v25 = vpop.eup %1547  ;;  %1559 = vpow2.f32 %v1241_v22 }
 0x28d   : > { %v995_v26 = vadd.f32 1.0, %v1548_v25  ;;  %v1550_v27 = vpop.eup %1549 }
 0x28e   : > { %1561 = vrcp.f32 %v994_v24  ;;  %v1552_v28 = vpop.eup %1551  ;;  %v1006_v37 = vadd.f32 1.0, %v1550_v27 }
 0x28f   : > { %1563 = vrcp.f32 %v995_v26  ;;  %v1554_v29 = vpop.eup %1553 }
 0x290   : > { %1565 = vrcp.f32 %v1006_v37 }
 0x294   : > { %v1556_v30 = vpop.eup %1555 }
 0x295   : > { %v1558_v31 = vpop.eup %1557  ;;  %v1018_v32 = vmul.f32 %v1556_v30, %v1552_v28 }
 0x296   : > { %v1019_v34 = vmul.f32 %v1558_v31, %v1554_v29  ;;  %v1560_v35 = vpop.eup %1559 }
 0x297   : > { %v1007_v41 = vadd.f32 1.0, %v1560_v35 }
 0x298   : > { %v1562_v36 = vpop.eup %1561 }
 0x299   : > { %v1016_v39 = vmul.f32 %v1562_v36, %v1014_v33  ;;  %v1564_v40 = vpop.eup %1563 }
 0x29a   : > { %v1017_v43 = vmul.f32 %v1564_v40, %v1015_v38 }
 0x29b   : > { %v1020_v42 = vadd.f32 %v1018_v32, %v1016_v39 }
 0x29c   : > { %v1021_v44 = vadd.f32 %v1019_v34, %v1017_v43 }
 0x29d   : > { %1567 = vtanh.f32 %v1020_v42  ;;  %1028 = vst [vmem:[%s345_s10] sm:$0xff] %v1020_v42 }
 0x29e   : > { %1569 = vrcp.f32 %v1007_v41  ;;  %1029 = vst [vmem:[%s345_s10 + $0x8] sm:$0xff] %v1021_v44 }
 0x29f   : > { %1571 = vtanh.f32 %v1021_v44 }
 0x2a0   : > { %1674 = shalt.err (!%p1671_p6)
}
 0x2a1   : > { %s1675_s26 = scalar_lea.hbm %s2167_s0, 256  ;;  %s1679_s12 = scalar_lea.hbm %s2249_s6, 512 }
 0x2a2   : > { %p1676_p8 = scmp.ne.s32.totalorder %s2167_s0, %s1675_s26  ;;  %p1680_p12 = scmp.lt.u32.totalorder %s2167_s0, %s2249_s6 }
 0x2a3   : > { %p1681_p11 = scmp.lt.u32.totalorder %s1679_s12, %s1675_s26  ;;  %p1683_p13 = scmp.lt.u32.totalorder %s1675_s26, %s2167_s0 }
 0x2a4   : > { %p1677_p4 = pnand %p1676_p8, %p2270_p3 }
 0x2a5   : > { %p1682_p10 = por %p1681_p11, %p1680_p12 }
 0x2a6   : > { %p1678_p0 = pneg %p1677_p4 }
 0x2a7   : > { %p1684_p7 = por %p1683_p13, %p1682_p10 }
 0x2a9   : > { %p1685_p9 = pnand %p1684_p7, %p1678_p0 }
 0x2ab   : > { %1688 = shalt.err (!%p1685_p9)
}
 0x2ac   : > { %1318 = dma.vmem_to_hbm [thread:$0]  (%p2270_p3), %s2169_s7, 256, %s2167_s0, %s1036_s20   ;;  %v1566_v45 = vpop.eup %1565 }
 0x2ad   : > { %v1568_v46 = vpop.eup %1567  ;;  %s338_s11 = scalar_lea.vmem [#allocation10], %s2000_s29  ;;  %s2199_s18 = scalar_lea.hbm %s2248_s5, %s1253_s30 }
 0x2ae   : > { %s1050_s19 = sshll.u32 %s338_s11, 4  ;;  %v1570_v47 = vpop.eup %1569  ;;  %v1024_v48 = vmul.f32 %v1568_v46, %v1566_v45  ;;  %s1031_s7 = scalar_lea.sflag [#allocation6], %s1990_s3  ;;  %s2201_s19 = int_to_ptr.vmem [resolvable:$true] %s1050_s19 }
 0x2af   : > { %v1572_v49 = vpop.eup %1571  ;;  %s1689_s29 = scalar_lea.vmem %s2201_s19, 256  ;;  %s1785_s0 = smov [#allocation10]  }
 0x2b0   : > { %v1025_v50 = vmul.f32 %v1572_v49, %v1570_v47  ;;  %1026 = vst [vmem:[%s338_s11] sm:$0xff] %v1024_v48  ;;  %p1690_p1 = scmp.ne.s32.totalorder %s2201_s19, %s1689_s29  ;;  %s1693_s20 = sshll.u32 %s1785_s0, 4  ;;  %s1694_s20 = int_to_ptr.vmem [resolvable:$false] %s1693_s20 }
 0x2b1   : > { %s1695_s25 = scalar_lea.vmem %s1694_s20, 512  ;;  %p1696_p6 = scmp.lt.s32.totalorder %s2201_s19, %s1694_s20 }
 0x2b2   : > { %1027 = vst [vmem:[%s338_s11 + $0x8] sm:$0xff] %v1025_v50  ;;  %p1691_p5 = pnand %p1690_p1, %p2270_p3  ;;  %p1697_p8 = scmp.lt.s32.totalorder %s1695_s25, %s1689_s29 }
 0x2b4   : > { %p1692_p2 = pneg %p1691_p5  ;;  %p1698_p4 = por %p1697_p8, %p1696_p6 }
 0x2b6   : > { %p1699_p0 = pnand %p1698_p4, %p1692_p2 }
 0x2b8   : > { %1702 = shalt.err (!%p1699_p0)
}
 0x2b9   : > { %s1703_s3 = scalar_lea.hbm %s2199_s18, 256  ;;  %s1707_s16 = scalar_lea.hbm %s2248_s5, 512 }
 0x2ba   : > { %p1704_p12 = scmp.ne.s32.totalorder %s2199_s18, %s1703_s3  ;;  %p1708_p13 = scmp.lt.u32.totalorder %s2199_s18, %s2248_s5 }
 0x2bb   : > { %p1709_p7 = scmp.lt.u32.totalorder %s1707_s16, %s1703_s3  ;;  %p1711_p1 = scmp.lt.u32.totalorder %s1703_s3, %s2199_s18 }
 0x2bc   : > { %p1705_p11 = pnand %p1704_p12, %p2270_p3 }
 0x2bd   : > { %p1710_p9 = por %p1709_p7, %p1708_p13 }
 0x2be   : > { %p1706_p10 = pneg %p1705_p11 }
 0x2bf   : > { %p1712_p5 = por %p1711_p1, %p1710_p9 }
 0x2c1   : > { %p1713_p2 = pnand %p1712_p5, %p1706_p10 }
 0x2c3   : > { %1716 = shalt.err (!%p1713_p2)
}
 0x2c4   : > { %1317 = dma.vmem_to_hbm [thread:$0]  (%p2270_p3), %s2201_s19, 256, %s2199_s18, %s1031_s7  }
 0x2c5 PF: > { %s1076_s10 = sand.u32 1, %s1755_s21   ;;  %p2271_p6 = scmp.ne.s32.totalorder %s2257_s28, 0 }
 0x2c6   : > { %p2272_p8 = scmp.ge.s32.totalorder %s1767_s24, 2  ;;  %s1077_s15 = scalar_lea.sflag [#allocation6], %s1076_s10 }
 0x2c8   : > { %p1333_p4 = pnand %p2272_p8, %p2271_p6 }
 0x2ca   : > { %1746 = dma.done.wait (!%p1333_p4), %s1077_s15, 256  }
 0x2cb   : > { %1748 = vsyncadd (!%p1333_p4), %s1077_s15, 4294967040  ;;  %s1086_s11 = scalar_lea.sflag [#allocation12], %s1076_s10 }
 0x2cc   : > { %1750 = dma.done.wait (!%p1333_p4), %s1086_s11, 256  }
 0x2cd   : > { %1752 = vsyncadd (!%p1333_p4), %s1086_s11, 4294967040  ;;  %p26_p3 = scmp.ge.s32.totalorder %s1877_s9, 4   ;;  %s2273_s21 = smov %s1759_s22 }
 0x2ce   : > { %s2274_s22 = smov %s1763_s23  ;;  %s2275_s23 = smov %s1908_s13 }
 0x2cf   : > { %s2276_s24 = smov %s1877_s9  ;;  %28 = sbr.rel (!%p26_p3) target bundleno = 12 (0xc), region = 122 }
 0x2d6   :  { %1091 = vsyncpa [#allocation5], 1 }
 0x2d7   :  { %1093 = vsyncpa [#allocation5 + $0x1], 1 }
 0x2d8   :  { %1094 = vsyncpa [#allocation8], 1 }
 0x2d9   :  { %1096 = vsyncpa [#allocation8 + $0x1], 1 }
 0x2da   :  { %1097 = vsyncpa [#allocation6], 1 }
 0x2db   :  { %1099 = vsyncpa [#allocation6 + $0x1], 1 }
 0x2dc   :  { %1100 = vsyncpa [#allocation12], 1 }
 0x2dd   :  { %1102 = vsyncpa [#allocation12 + $0x1], 1 }

</bundles_post_ra>
